<compile_context>
chip_gen: v5e
topology: v5e:2x2
jax: 0.10.0
libtpu: 0.0.40
codegen_flags: <defaults>
</compile_context>

<pallas_src>
import math

import jax
import jax.numpy as jnp
from jax.experimental import pallas as pl
from jax.experimental.pallas import tpu as pltpu


def _unnormalize_kernel(x_ref, stats_ref, o_ref):
    # stats_ref is a (2, tile_f) f32 block: row 0 = std, row 1 = mean.
    std = stats_ref[0:1, :]     # (1, tile_f), broadcast over the batch tile
    mean = stats_ref[1:2, :]    # (1, tile_f)
    x = x_ref[...].astype(jnp.float32)          # FMA in f32 (free: mem-bound)
    o_ref[...] = (x * std + mean).astype(o_ref.dtype)


def _sublane_multiple(dtype):
    # Sub-32-bit dtypes pack along sublanes: f32 -> 8, bf16 -> 16, int8/fp8 -> 32.
    itemsize = jnp.dtype(dtype).itemsize
    return {4: 8, 2: 16, 1: 32}.get(itemsize, 8)


def _vmem_capacity_bytes():
    try:
        info = pltpu.get_tpu_info()
        cap = getattr(info, "vmem_capacity_bytes", None)
        if cap:
            return int(cap)
    except Exception:
        pass
    return 64 << 20  # conservative fallback = v7x per-TensorCore VMEM


def _round_up(n, m):
    return -(-n // m) * m


def unnormalize(x, mean, std):
    """x: (..., F); mean/std: (F,). Returns x * std + mean in x.dtype."""
    orig_shape = x.shape
    F = orig_shape[-1]
    x2 = x.reshape(-1, F)
    B = x2.shape[0]
    itemsize = jnp.dtype(x.dtype).itemsize
    sub = _sublane_multiple(x.dtype)

    # Per-feature stats kept in f32 (single small resident block).
    stats = jnp.stack([jnp.asarray(std), jnp.asarray(mean)], axis=0)
    stats = stats.astype(jnp.float32)                       # (2, F)

    # Lane-dense repack: make the last dim a multiple of 128 when possible.
    if F % 128 != 0:
        k = 128 // math.gcd(F, 128)
        if k > 1 and B % k == 0 and B >= k:
            B = B // k
            F = F * k
            x2 = x2.reshape(B, F)
            stats = jnp.tile(stats, (1, k))                 # (2, k*F)

    # Per-generation VMEM budgets: block ~ cap/8, scoped limit ~ 0.75*cap.
    vmem_cap = _vmem_capacity_bytes()
    per_block_bytes = max(1 << 20, vmem_cap // 8)
    vmem_limit_bytes = int(vmem_cap * 0.75)

    bytes_per_row = F * itemsize
    rows_fit = per_block_bytes // bytes_per_row

    if rows_fit >= B or rows_fit >= sub:
        # Common path: full feature extent per block, tile over batch only.
        tile_f = F
        tile_b = min(B, rows_fit)
        if tile_b < B:
            tile_b = max(sub, (tile_b // sub) * sub)        # multiple of sublane
        # else: tile_b == B -> full-extent block (any size allowed).
    else:
        # Pathologically wide rows: 2-D tiling, feature tile a multiple of 128.
        tile_b = B if B <= sub else sub
        lanes_fit = per_block_bytes // (tile_b * itemsize)
        tile_f = max(128, (lanes_fit // 128) * 128)
        if tile_f >= F:
            tile_f = F

    grid_b = pl.cdiv(B, tile_b)
    grid_f = pl.cdiv(F, tile_f)

    # Keep >= 2 grid steps when possible so v7x can split the parallel batch
    # axis across both TensorCores (no-op on v5e/v6e).
    if grid_b * grid_f == 1 and B >= 2 * sub:
        tile_b = _round_up(_round_up(B, 2) // 2, sub)
        grid_b = pl.cdiv(B, tile_b)

    out = pl.pallas_call(
        _unnormalize_kernel,
        out_shape=jax.ShapeDtypeStruct((B, F), x.dtype),
        grid_spec=pl.GridSpec(
            grid=(grid_b, grid_f),
            in_specs=[
                pl.BlockSpec((tile_b, tile_f), lambda i, j: (i, j)),
                # Constant along the batch axis -> stats stay resident.
                pl.BlockSpec((2, tile_f), lambda i, j: (0, j)),
            ],
            out_specs=pl.BlockSpec((tile_b, tile_f), lambda i, j: (i, j)),
        ),
        compiler_params=pltpu.CompilerParams(
            dimension_semantics=("parallel", "parallel"),
            vmem_limit_bytes=vmem_limit_bytes,
        ),
    )(x2, stats)

    return out.reshape(orig_shape)


if __name__ == "__main__":
    key = jax.random.PRNGKey(0)
    kx, km, ks = jax.random.split(key, 3)

    # Small actuator-network-like feature width (NOT a multiple of 128):
    # exercises the lane-dense repack path (16 rows x 32 feats -> 4 x 128).
    B, F = 16, 32
    x = jax.random.normal(kx, (B, F), dtype=jnp.float32)
    mean = jax.random.normal(km, (F,), dtype=jnp.float32)
    std = jax.random.uniform(ks, (F,), dtype=jnp.float32, minval=0.5, maxval=2.0)

    out = jax.block_until_ready(unnormalize(x, mean, std))
    ref = x * std[None, :] + mean[None, :]
    assert out.shape == (B, F) and out.dtype == jnp.float32
    assert jnp.allclose(out, ref, atol=1e-6, rtol=1e-6)

    # 128-multiple feature width with a batch that is NOT a multiple of the
    # tile: exercises the masked partial final block (no pad / slice copies).
    F2 = 128
    x2 = jax.random.normal(kx, (13, F2), dtype=jnp.float32)
    mean2 = jax.random.normal(km, (F2,), dtype=jnp.float32)
    std2 = jax.random.uniform(ks, (F2,), dtype=jnp.float32, minval=0.5, maxval=2.0)
    out2 = jax.block_until_ready(unnormalize(x2, mean2, std2))
    assert jnp.allclose(out2, x2 * std2[None, :] + mean2[None, :],
                        atol=1e-6, rtol=1e-6)

    # Leading batch dims (B, T, F) path through the reshape wrapper.
    x3 = jax.random.normal(kx, (2, 8, F), dtype=jnp.float32)
    out3 = jax.block_until_ready(unnormalize(x3, mean, std))
    assert jnp.allclose(out3, x3 * std + mean, atol=1e-6, rtol=1e-6)

    print("KERNEL_OK")
</pallas_src>

<mosaic_0001>
module attributes {stable_mosaic.version = 11 : i64} {
  func.func @_unnormalize_kernel(%arg0: i32, %arg1: i32, %arg2: memref<4x128xf32, #tpu.memory_space<vmem>>, %arg3: memref<2x128xf32, #tpu.memory_space<vmem>>, %arg4: memref<4x128xf32, #tpu.memory_space<vmem>>) attributes {dimension_semantics = [#tpu.dimension_semantics<parallel>, #tpu.dimension_semantics<parallel>], iteration_bounds = array<i64: 1, 1>, scalar_prefetch = 0 : i64, scratch_operands = 0 : i64, tpu.core_type = #tpu.core_type<tc>, window_params = [{transform_indices = @transform_0, window_bounds = array<i64: 4, 128>}, {transform_indices = @transform_1, window_bounds = array<i64: 2, 128>}, {transform_indices = @transform_2, window_bounds = array<i64: 4, 128>}]} {
    %c0 = arith.constant 0 : index
    %c0_0 = arith.constant 0 : index
    %0 = vector.load %arg3[%c0, %c0_0] : memref<2x128xf32, #tpu.memory_space<vmem>>, vector<1x128xf32>
    %c1 = arith.constant 1 : index
    %c0_1 = arith.constant 0 : index
    %1 = vector.load %arg3[%c1, %c0_1] : memref<2x128xf32, #tpu.memory_space<vmem>>, vector<1x128xf32>
    %c0_2 = arith.constant 0 : index
    %c0_3 = arith.constant 0 : index
    %2 = vector.load %arg2[%c0_2, %c0_3] : memref<4x128xf32, #tpu.memory_space<vmem>>, vector<4x128xf32>
    %3 = vector.broadcast %0 : vector<1x128xf32> to vector<4x128xf32>
    %4 = arith.mulf %2, %3 : vector<4x128xf32>
    %5 = vector.broadcast %1 : vector<1x128xf32> to vector<4x128xf32>
    %6 = arith.addf %4, %5 : vector<4x128xf32>
    %c0_4 = arith.constant 0 : index
    %c0_5 = arith.constant 0 : index
    %7 = vector.load %arg4[%c0_4, %c0_5] : memref<4x128xf32, #tpu.memory_space<vmem>>, vector<4x128xf32>
    tpu.vector_store %arg4[%c0_4, %c0_5], %6 {strides = array<i32>} : memref<4x128xf32, #tpu.memory_space<vmem>>, vector<4x128xf32>,
    return
  }
  func.func @transform_0(%arg0: i32, %arg1: i32) -> (i32, i32) {
    %c0_i32 = arith.constant 0 : i32
    return %arg0, %arg1 : i32, i32
  }
  func.func @transform_1(%arg0: i32, %arg1: i32) -> (i32, i32) {
    %c0_i32 = arith.constant 0 : i32
    %c0_i32_0 = arith.constant 0 : i32
    return %c0_i32, %arg1 : i32, i32
  }
  func.func @transform_2(%arg0: i32, %arg1: i32) -> (i32, i32) {
    %c0_i32 = arith.constant 0 : i32
    return %arg0, %arg1 : i32, i32
  }
}

</mosaic_0001>

<bundles_post_ra>
// kernel: tpu_custom_call.1
= control target key start
LH: loop header
LB: loop body
LE: loop exit
PB: predicated region body
PF: predicated region fallthrough
CT: control target
= control target key end

     0   :  { %7 = vsyncpa [#allocation3], 0  ;;  %s176_s0 = inlined_call_operand.hbm [shape: f32[4,128], index: 0, kind: input, shape index: {}]   ;;  %s177_s1 = inlined_call_operand.hbm [shape: f32[2,128], index: 1, kind: input, shape index: {}]   ;;  %s178_s2 = inlined_call_operand.hbm [shape: f32[4,128], index: 2, kind: output, shape index: {}]  }
   0x1   :  { %8 = vsyncpa [#allocation6], 0 }
   0x2   :  { %9 = vsyncpa [#allocation4], 0  ;;  %s15_s11 = sshll.u32 %s176_s0, 4  ;;  %s149_s12 = smov [#allocation2]   ;;  %s16_s11 = int_to_ptr.hbm [resolvable:$true] %s15_s11 }
   0x3   :  { %s17_s13 = sshll.u32 %s149_s12, 4  ;;  %s26_s16 = sshll.u32 %s177_s1, 4  ;;  %s18_s13 = int_to_ptr.vmem [resolvable:$true] %s17_s13  ;;  %s27_s16 = int_to_ptr.hbm [resolvable:$true] %s26_s16 }
   0x4   :  { %20 = dma.hbm_to_vmem [thread:$0]  %s16_s11, 64, %s18_s13, [#allocation3]  }
   0x5   :  { %s150_s17 = smov [#allocation5]  }
   0x6   :  { %s28_s18 = sshll.u32 %s150_s17, 4  ;;  %s29_s18 = int_to_ptr.vmem [resolvable:$true] %s28_s18 }
   0x7   :  { %31 = dma.hbm_to_vmem [thread:$0]  %s27_s16, 32, %s29_s18, [#allocation6]  }
   0x8   :  { %143 = dma.done.wait [#allocation3], 64  }
   0x9   :  { %144 = vsyncadd [#allocation3], 4294967232 }
   0xa   :  { %145 = dma.done.wait [#allocation6], 32  }
   0xb   :  { %146 = vsyncadd [#allocation6], 4294967264  ;;  %v42_v0 = vld [vmem:[#allocation2] sm:$0xf]  ;;  %v69_v1 = vld [vmem:[#allocation5] ss:$0 sm:$0xff] }
   0xc   :  { %v70_v2 = vld [vmem:[#allocation5 + $0x1] ss:$0 sm:$0xff]  ;;  %s151_s0 = smov [#allocation7]   ;;  %s55_s22 = sshll.u32 %s178_s2, 4  ;;  %v44_v3 = vmul.f32 %v69_v1, %v42_v0  ;;  %s56_s22 = int_to_ptr.hbm [resolvable:$true] %s55_s22 }
   0xd   :  { %s53_s19 = sshll.u32 %s151_s0, 4  ;;  %s54_s19 = int_to_ptr.vmem [resolvable:$true] %s53_s19 }
   0xe   :  { %v46_v4 = vadd.f32 %v70_v2, %v44_v3 }
  0x10   :  { %47 = vst [vmem:[#allocation7] sm:$0xf] %v46_v4 }
  0x11   :  { %58 = dma.vmem_to_hbm [thread:$0]  %s54_s19, 64, %s56_s22, [#allocation4]  }
  0x12   :  { %147 = dma.done.wait [#allocation4], 64  }
  0x13   :  { %148 = vsyncadd [#allocation4], 4294967232 }
  0x14   :  { %63 = vsyncpa [#allocation3], 1 }
  0x15   :  { %64 = vsyncpa [#allocation6], 1 }
  0x16   :  { %65 = vsyncpa [#allocation4], 1 }

</bundles_post_ra>
